<compile_context>
chip_gen: v5e
topology: v5e:2x2
jax: 0.10.0
libtpu: 0.0.40
codegen_flags: <defaults>
</compile_context>

<pallas_src>
import functools

import jax
import jax.numpy as jnp
import numpy as np
from jax.experimental import pallas as pl
from jax.experimental.pallas import tpu as pltpu


def _voxel_key_kernel(xyz_ref, out_ref, *, G, P, voxel_size):
    """One grid step = one batch; emits a (5, G*P) int32 key slab (lane-dense)."""
    b = pl.program_id(0)                    # batch index
    GP = G * P

    xyz = xyz_ref[...]                      # (1, 3, G*P) float32, xyz on sublanes
    # Keep the division (not reciprocal-mul) for bit-exact parity with torch.
    vox = jnp.floor(xyz / voxel_size).astype(jnp.int32)          # (1, 3, G*P)

    # Per-lane flat index over the fused (group, point) axis.
    lane = jax.lax.broadcasted_iota(jnp.int32, (1, 1, GP), 2)    # (1, 1, G*P)
    if (P & (P - 1)) == 0:
        # power-of-two point count -> cheap shift for the group id
        g_row = lane >> (int(P).bit_length() - 1)
    else:
        g_row = lane // P
    b_row = jnp.full((1, 1, GP), b, dtype=jnp.int32)

    # Direct full-lane-width row writes (no cross-lane concat / masked stores).
    out_ref[:, 0:1, :] = b_row              # batch id
    out_ref[:, 1:2, :] = g_row              # group id
    out_ref[:, 2:5, :] = vox                # voxel xyz indices


@functools.partial(jax.jit, static_argnames=("voxel_size",))
def voxel_cluster_keys(pred, voxel_size):
    """(B, G, P, F) float -> (B, 5, G, P) int32 cluster keys (device)."""
    B, G, P, F = pred.shape
    GP = G * P

    # Feed only xyz, transposed so the fused G*P axis is the (lane) last dim.
    # This is wrapper-side layout plumbing; the kernel then does dense loads.
    xyz_t = jnp.moveaxis(pred[..., :3].astype(jnp.float32), -1, 1)   # (B, 3, G, P)
    xyz_t = xyz_t.reshape(B, 3, GP)                                  # (B, 3, G*P)

    kernel = functools.partial(_voxel_key_kernel, G=G, P=P,
                               voxel_size=float(voxel_size))

    keys_t = pl.pallas_call(
        kernel,
        out_shape=jax.ShapeDtypeStruct((B, 5, GP), jnp.int32),
        grid=(B,),
        in_specs=[pl.BlockSpec((1, 3, GP), lambda b: (b, 0, 0))],
        out_specs=pl.BlockSpec((1, 5, GP), lambda b: (b, 0, 0)),
        compiler_params=pltpu.CompilerParams(
            dimension_semantics=("parallel",)),
    )(xyz_t)

    return keys_t.reshape(B, 5, G, P)


class FixedSizeScheduler:
    """Minimal stand-in for the point2vec size scheduler (only .value is used)."""

    def __init__(self, value):
        self.value = value


class VoxelClustering:
    def __init__(self, size_scheduler):
        self.size_scheduler = size_scheduler

    def __call__(self, pred, active_mask):
        B, G, P, F = pred.shape
        assert F >= 3

        # Hot path on TPU: per-point (batch, group, voxel xyz) keys, lane-dense.
        keys_t = voxel_cluster_keys(pred, float(self.size_scheduler.value))
        keys_np = np.asarray(jax.block_until_ready(keys_t))     # (B, 5, G, P)
        keys_np = np.moveaxis(keys_np, 1, 3)                    # (B, G, P, 5) view

        # TODO(synk): masked-select over active groups, bit-packed keys and
        # unique-with-inverse all produce data-dependent shapes / need bounded
        # voxel ranges -> no static-shape Pallas equivalent; kept host-side to
        # preserve the torch semantics exactly.
        mask = np.asarray(active_mask).astype(bool)             # (B, G)
        cluster_keys = keys_np[mask].reshape(-1, 5)             # (N_active*P, 5)

        unique_keys, cluster_indices = np.unique(
            cluster_keys, axis=0, return_inverse=True)
        cluster_indices = cluster_indices.reshape(-1)

        return jnp.asarray(unique_keys), jnp.asarray(cluster_indices)


if __name__ == "__main__":
    key = jax.random.PRNGKey(0)
    k1, k2 = jax.random.split(key)

    # Small shapes consistent with the module: B batches, G groups, P points,
    # F predicted features per point (first 3 = xyz offsets).
    B, G, P, F = 2, 4, 16, 6
    pred = jax.random.normal(k1, (B, G, P, F), dtype=jnp.float32)
    active_mask = jax.random.bernoulli(k2, 0.7, (B, G))

    module = VoxelClustering(FixedSizeScheduler(0.1))
    unique_keys, cluster_indices = module(pred, active_mask)
    jax.block_until_ready((unique_keys, cluster_indices))

    # Basic sanity: shapes + inverse indices stay within the unique-key table.
    n_active_points = int(np.asarray(active_mask).sum()) * P
    assert cluster_indices.shape == (n_active_points,)
    assert unique_keys.shape[1] == 5
    assert int(cluster_indices.max(initial=-1)) < unique_keys.shape[0]

    # Cross-check a few rows against a pure-numpy reference of the key math.
    pred_np = np.asarray(pred)
    mask_np = np.asarray(active_mask).astype(bool)
    ref_rows = []
    for b in range(B):
        for g in range(G):
            if mask_np[b, g]:
                vox = np.floor(pred_np[b, g, :, :3] / 0.1).astype(np.int32)
                ids = np.stack([np.full(P, b), np.full(P, g)], axis=1)
                ref_rows.append(np.concatenate([ids, vox], axis=1))
    ref_keys = np.concatenate(ref_rows, axis=0)
    ref_unique = np.unique(ref_keys, axis=0)
    assert np.array_equal(np.asarray(unique_keys), ref_unique)

    print("KERNEL_OK")
</pallas_src>

<mosaic_0001>
module attributes {stable_mosaic.version = 11 : i64} {
  func.func @_voxel_key_kernel(%arg0: i32, %arg1: memref<1x3x64xf32, #tpu.memory_space<vmem>>, %arg2: memref<1x5x64xi32, #tpu.memory_space<vmem>>) attributes {dimension_semantics = [#tpu.dimension_semantics<parallel>], iteration_bounds = array<i64: 2>, scalar_prefetch = 0 : i64, scratch_operands = 0 : i64, tpu.core_type = #tpu.core_type<tc>, window_params = [{transform_indices = @transform_0, window_bounds = array<i64: 1, 3, 64>}, {transform_indices = @transform_1, window_bounds = array<i64: 1, 5, 64>}]} {
    %c0 = arith.constant 0 : index
    %c0_0 = arith.constant 0 : index
    %c0_1 = arith.constant 0 : index
    %0 = vector.load %arg1[%c0, %c0_0, %c0_1] : memref<1x3x64xf32, #tpu.memory_space<vmem>>, vector<1x3x64xf32>
    %cst = arith.constant 1.000000e-01 : f32
    %1 = vector.broadcast %cst : f32 to vector<1x3x64xf32>
    %2 = arith.divf %0, %1 : vector<1x3x64xf32>
    %3 = math.floor %2 : vector<1x3x64xf32>
    %4 = arith.fptosi %3 : vector<1x3x64xf32> to vector<1x3x64xi32>
    %5 = tpu.iota {dimensions = array<i32: 2>} : vector<1x1x64xi32>
    %c4_i32 = arith.constant 4 : i32
    %6 = vector.broadcast %c4_i32 : i32 to vector<1x1x64xi32>
    %7 = arith.shrsi %5, %6 : vector<1x1x64xi32>
    %8 = vector.broadcast %arg0 : i32 to vector<1x1x64xi32>
    %c0_2 = arith.constant 0 : index
    %c0_3 = arith.constant 0 : index
    %c0_4 = arith.constant 0 : index
    %9 = vector.load %arg2[%c0_2, %c0_3, %c0_4] : memref<1x5x64xi32, #tpu.memory_space<vmem>>, vector<1x1x64xi32>
    tpu.vector_store %arg2[%c0_2, %c0_3, %c0_4], %8 {strides = array<i32>} : memref<1x5x64xi32, #tpu.memory_space<vmem>>, vector<1x1x64xi32>,
    %c0_5 = arith.constant 0 : index
    %c1 = arith.constant 1 : index
    %c0_6 = arith.constant 0 : index
    %10 = vector.load %arg2[%c0_5, %c1, %c0_6] : memref<1x5x64xi32, #tpu.memory_space<vmem>>, vector<1x1x64xi32>
    tpu.vector_store %arg2[%c0_5, %c1, %c0_6], %7 {strides = array<i32>} : memref<1x5x64xi32, #tpu.memory_space<vmem>>, vector<1x1x64xi32>,
    %c0_7 = arith.constant 0 : index
    %c2 = arith.constant 2 : index
    %c0_8 = arith.constant 0 : index
    %11 = vector.load %arg2[%c0_7, %c2, %c0_8] : memref<1x5x64xi32, #tpu.memory_space<vmem>>, vector<1x3x64xi32>
    tpu.vector_store %arg2[%c0_7, %c2, %c0_8], %4 {strides = array<i32>} : memref<1x5x64xi32, #tpu.memory_space<vmem>>, vector<1x3x64xi32>,
    return
  }
  func.func @transform_0(%arg0: i32) -> (i32, i32, i32) {
    %c0_i32 = arith.constant 0 : i32
    %c0_i32_0 = arith.constant 0 : i32
    %c0_i32_1 = arith.constant 0 : i32
    return %arg0, %c0_i32, %c0_i32_0 : i32, i32, i32
  }
  func.func @transform_1(%arg0: i32) -> (i32, i32, i32) {
    %c0_i32 = arith.constant 0 : i32
    %c0_i32_0 = arith.constant 0 : i32
    %c0_i32_1 = arith.constant 0 : i32
    return %arg0, %c0_i32, %c0_i32_0 : i32, i32, i32
  }
}

</mosaic_0001>

<bundles_post_ra>
// kernel: voxel_cluster_keys.1
= control target key start
LH: loop header
LB: loop body
LE: loop exit
PB: predicated region body
PF: predicated region fallthrough
CT: control target
= control target key end

     0   :  { %s226_s6 = smov 0   ;;  %s243_s0 = inlined_call_operand.vmem [shape: f32[2,3,64], index: 0, kind: input, shape index: {}]   ;;  %s244_s1 = inlined_call_operand.vmem [shape: s32[2,5,64], index: 1, kind: output, shape index: {}]  }
   0x1 LB: > { %s185_s7 = sadd.s32 4294967295, %s213_s6   ;;  %p189_p0 = scmp.ge.s32.totalorder %s213_s6, 1  ;;  %s213_s6 = sphi %s226_s6, %s11_s6  }
   0x2   : > { %p86_p1 = scmp.lt.s32.totalorder %s213_s6, 3 }
   0x4   : > { %p87_p2 = pnand %p189_p0, %p86_p1 }
   0x5   : > { %p104_p3 = scmp.lt.s32.totalorder (!%p87_p2), %s185_s7, 1 }
   0x6   : > { %90 = sbr.rel (%p87_p2) target bundleno = 35 (0x23), region = 24 }
   0xb   : > { %v123_v0 = vlaneseq  ;;  %v215_v1 = vmov 0.1   ;;  %s105_s8 = scalar_select %p104_p3, %s185_s7, 1  ;;  %v126_v3 = vstv %s185_s7  ;;  %vm127_vm0 = vcmask 516096  }
   0xc   : > { %205 = vrcp.f32 %v215_v1  ;;  %vm130_vm2 = vcmask 518144  }
   0xd   : > { %v124_v2 = vand.u32 127, %v123_v0  ;;  %s191_s9 = sshll.u32 %s105_s8, 3  ;;  %s190_s13 = sshll.u32 %s105_s8, 2 }
   0xe   : > { %s111_s12 = scalar_lea.vmem %s244_s1, %s191_s9  ;;  %s107_s16 = scalar_lea.vmem %s243_s0, %s190_s13 }
   0xf   : > { %v125_v4 = vshra.s32 %v124_v2, 4  ;;  %128 = vst.msk [vmem:[%s111_s12] sm:$0x1] %vm127_vm0, %v126_v3  ;;  %v112_v9 = vld [vmem:[%s107_s16] sm:$0x7] }
  0x11   : > { %129 = vst.msk [vmem:[%s111_s12 + $0x1] sm:$0x1] %vm127_vm0, %v125_v4 }
  0x12   : > { %v206_v5 = vpop.eup %205 }
  0x13   : > { %v114_v6 = vmul.f32 0.1, %v206_v5  ;;  %vm118_vm1 = vweird.f32 %v206_v5 }
  0x15   : > { %v115_v7 = vsub.f32 1.0, %v114_v6 }
  0x17   : > { %v116_v8 = vmul.f32 %v206_v5, %v115_v7 }
  0x19   : > { %v117_v10 = vadd.f32 %v206_v5, %v116_v8 }
  0x1b   : > { %v119_v11 = vsel %vm118_vm1, %v206_v5, %v117_v10 }
  0x1c   : > { %v120_v12 = vmul.f32 %v119_v11, %v112_v9 }
  0x1e   : > { %v121_v13 = vfloor.f32 %v120_v12 }
  0x20   : > { %v195_v14 = vcvt.f32.s32 %v121_v13 }
  0x22   : > { %131 = vst.msk [vmem:[%s111_s12 + $0x2] sm:$0x7] %vm130_vm2, %v195_v14 }
  0x23 PF: > { %s11_s6 = sadd.s32 1, %s213_s6  }
  0x24   : > { %p8_p4 = scmp.ge.s32.totalorder %s11_s6, 4  }
  0x26   :  { %10 = sbr.rel (!%p8_p4) target bundleno = 1 (0x1), region = 54 }

</bundles_post_ra>
